<compile_context>
chip_gen: v6e
topology: v6e:2x2x1
jax: 0.10.0
libtpu: 0.0.40
codegen_flags: <defaults>
</compile_context>

<pallas_src>
import functools

import numpy as np
import jax
import jax.numpy as jnp
from jax.experimental import pallas as pl
from jax.experimental.pallas import tpu as pltpu

_LANE = 128


def _channel_reduce_labels(yp, yt, num_classes):
    """p_correct from integer labels.  yp: (C, RT, 128) f32, yt: (RT, 128) int32."""
    if num_classes <= 32:
        # Small class count: unrolled select-add against constants; no one-hot, no iota.
        p = jnp.zeros(yp.shape[1:], jnp.float32)
        for c in range(num_classes):
            p = p + jnp.where(yt == c, yp[c], 0.0)
        return p
    cls = jax.lax.broadcasted_iota(jnp.int32, yp.shape, 0)
    return jnp.sum(jnp.where(cls == yt[None], yp, 0.0), axis=0)


def _finalize(loss, acc_ref, out_ref, j, rem_rows):
    """Accumulate the (RT,128) per-pixel loss block; on the last row-tile mask the ragged
    row tail (if any), then reduce once and write this batch row's partial sum."""
    last = pl.num_programs(1) - 1
    if rem_rows:
        rows = jax.lax.broadcasted_iota(jnp.int32, loss.shape, 0)
        # Select (not multiply): garbage in the out-of-bounds tail cannot inject NaN/Inf.
        loss = jnp.where((j != last) | (rows < rem_rows), loss, 0.0)
    acc_ref[...] += loss

    @pl.when(j == last)
    def _():
        out_ref[...] = jnp.sum(acc_ref[...]).reshape(1, 1, 1)


def _loss_kernel_labels(yp_ref, yt_ref, out_ref, acc_ref, *,
                        inv_temp, log_const, rem_rows, num_classes):
    """y_true given as integer class labels."""
    j = pl.program_id(1)

    @pl.when(j == 0)
    def _():
        acc_ref[...] = jnp.zeros_like(acc_ref)

    yp = yp_ref[0].astype(jnp.float32)      # (C, RT, 128): classes lead, pixels dense in vregs
    yt = yt_ref[0, 0]                       # (RT, 128) int32
    p_correct = _channel_reduce_labels(yp, yt, num_classes)

    z = (1.0 - 2.0 * p_correct) * inv_temp + log_const   # -delta/T + log(1/T - 1)
    loss = jnp.logaddexp(0.0, z)                          # softplus(z), (RT, 128)
    _finalize(loss, acc_ref, out_ref, j, rem_rows)


def _loss_kernel_dense(yp_ref, yh_ref, out_ref, acc_ref, *,
                       inv_temp, log_const, rem_rows):
    """y_true already dense (same shape as y_pred)."""
    j = pl.program_id(1)

    @pl.when(j == 0)
    def _():
        acc_ref[...] = jnp.zeros_like(acc_ref)

    yp = yp_ref[0].astype(jnp.float32)                    # (C, RT, 128)
    yh = yh_ref[0].astype(jnp.float32)                    # (C, RT, 128)
    p_correct = jnp.sum(yp * yh, axis=0)                  # (RT, 128), pure VALU adds

    z = (1.0 - 2.0 * p_correct) * inv_temp + log_const
    loss = jnp.logaddexp(0.0, z)
    _finalize(loss, acc_ref, out_ref, j, rem_rows)


def reconstruction_loss(y_pred, y_true, temperature=0.01,
                        target_block_bytes=2 * 1024 * 1024):
    """Pallas-backed equivalent of ReconstructionLoss.forward."""
    B, C, H, W = y_pred.shape
    S = H * W
    n_total = B * S

    inv_temp = float(1.0 / temperature)
    log_const = float(np.log(1.0 / temperature - 1.0))

    labels = (y_true.ndim == 3)
    yp_flat = y_pred.reshape(B, C, S)
    if labels:
        yt_flat = y_true.reshape(B, S).astype(jnp.int32)
    else:
        yt_flat = y_true.reshape(B, C, S)

    R = S // _LANE                 # number of full 128-pixel rows per image
    tail = S - R * _LANE           # leftover pixels (< 128) handled in plain JAX

    total = jnp.float32(0.0)

    if R > 0:
        main_px = R * _LANE
        if tail:
            yp_main = yp_flat[:, :, :main_px]
            sec_main = yt_flat[:, :main_px] if labels else yt_flat[:, :, :main_px]
        else:
            yp_main = yp_flat
            sec_main = yt_flat
        yp_main = yp_main.reshape(B, C, R, _LANE)          # free when tail == 0
        if labels:
            sec_main = sec_main.reshape(B, 1, R, _LANE)
        else:
            sec_main = sec_main.reshape(B, C, R, _LANE)

        # Rows per block from a byte budget; multiple of 8 sublanes (or the full extent).
        itemsize = y_pred.dtype.itemsize
        rt = target_block_bytes // (C * _LANE * itemsize)
        rt = max(8, (rt // 8) * 8)
        if rt >= R:
            rt = R
        nt = int(pl.cdiv(R, rt))
        rem_rows = R % rt          # ragged rows in the last tile (0 => none)

        yp_spec = pl.BlockSpec((1, C, rt, _LANE), lambda b, j: (b, 0, j, 0))
        out_spec = pl.BlockSpec((1, 1, 1), lambda b, j: (b, 0, 0))
        if labels:
            sec_spec = pl.BlockSpec((1, 1, rt, _LANE), lambda b, j: (b, 0, j, 0))
            kernel = functools.partial(_loss_kernel_labels, inv_temp=inv_temp,
                                       log_const=log_const, rem_rows=rem_rows,
                                       num_classes=C)
        else:
            sec_spec = pl.BlockSpec((1, C, rt, _LANE), lambda b, j: (b, 0, j, 0))
            kernel = functools.partial(_loss_kernel_dense, inv_temp=inv_temp,
                                       log_const=log_const, rem_rows=rem_rows)

        partials = pl.pallas_call(
            kernel,
            out_shape=jax.ShapeDtypeStruct((B, 1, 1), jnp.float32),
            grid_spec=pltpu.PrefetchScalarGridSpec(
                num_scalar_prefetch=0,
                grid=(B, nt),
                in_specs=[yp_spec, sec_spec],
                out_specs=out_spec,
                scratch_shapes=[pltpu.VMEM((rt, _LANE), jnp.float32)],
            ),
            compiler_params=pltpu.CompilerParams(
                dimension_semantics=("parallel", "arbitrary"),  # B across cores, rows reduce
                vmem_limit_bytes=32 * 1024 * 1024,
            ),
        )(yp_main, sec_main)
        total = total + jnp.sum(partials)

    if tail:
        # <128 pixels per image: negligible work, plain JAX keeps the kernel mask-free.
        yp_t = yp_flat[:, :, R * _LANE:].astype(jnp.float32)          # (B, C, tail)
        if labels:
            yt_t = yt_flat[:, R * _LANE:]                              # (B, tail)
            p = jnp.take_along_axis(yp_t, yt_t[:, None, :], axis=1)[:, 0, :]
        else:
            yh_t = yt_flat[:, :, R * _LANE:].astype(jnp.float32)
            p = jnp.sum(yp_t * yh_t, axis=1)
        z = (1.0 - 2.0 * p) * inv_temp + log_const
        total = total + jnp.sum(jnp.logaddexp(0.0, z))

    return total / float(n_total)


def _reference_loss(y_pred, y_true, temperature=0.01):
    """Pure-JAX reference mirroring the PyTorch forward exactly."""
    if y_true.ndim == 3:
        y_hot = jax.nn.one_hot(y_true, y_pred.shape[1], dtype=y_pred.dtype)
        y_hot = jnp.transpose(y_hot, (0, 3, 1, 2))
    else:
        y_hot = y_true
    p_correct = jnp.sum(y_pred * y_hot, axis=1)
    delta = p_correct - (1.0 - p_correct)
    z = -delta / temperature + np.log(1.0 / temperature - 1.0)
    return jnp.mean(jnp.logaddexp(0.0, z))


if __name__ == "__main__":
    key = jax.random.PRNGKey(0)
    k1, k2, k3, k4 = jax.random.split(key, 4)

    # Case 1: small aligned shape (H*W = 256), label and dense paths.
    B, C, H, W = 2, 4, 16, 16
    logits = jax.random.normal(k1, (B, C, H, W), dtype=jnp.float32)
    y_pred = jax.nn.softmax(logits, axis=1)                            # class probabilities
    y_true = jax.random.randint(k2, (B, H, W), 0, C, dtype=jnp.int32)  # integer class labels

    loss_labels = reconstruction_loss(y_pred, y_true, temperature=0.01)
    jax.block_until_ready(loss_labels)
    ref_labels = _reference_loss(y_pred, y_true, temperature=0.01)
    np.testing.assert_allclose(np.asarray(loss_labels), np.asarray(ref_labels),
                               rtol=2e-5, atol=1e-5)

    y_hot = jnp.transpose(jax.nn.one_hot(y_true, C, dtype=jnp.float32), (0, 3, 1, 2))
    loss_dense = reconstruction_loss(y_pred, y_hot, temperature=0.01)
    jax.block_until_ready(loss_dense)
    ref_dense = _reference_loss(y_pred, y_hot, temperature=0.01)
    np.testing.assert_allclose(np.asarray(loss_dense), np.asarray(ref_dense),
                               rtol=2e-5, atol=1e-5)

    # Case 2: multi-row-tile accumulation + non-128-aligned spatial tail.
    # H*W = 2079 = 16*128 + 31; small block budget forces 8-row tiles -> grid (B, 2).
    B2, C2, H2, W2 = 2, 4, 33, 63
    logits2 = jax.random.normal(k3, (B2, C2, H2, W2), dtype=jnp.float32)
    y_pred2 = jax.nn.softmax(logits2, axis=1)
    y_true2 = jax.random.randint(k4, (B2, H2, W2), 0, C2, dtype=jnp.int32)
    loss2 = reconstruction_loss(y_pred2, y_true2, temperature=0.01,
                                target_block_bytes=C2 * _LANE * 4 * 8)
    jax.block_until_ready(loss2)
    ref2 = _reference_loss(y_pred2, y_true2, temperature=0.01)
    np.testing.assert_allclose(np.asarray(loss2), np.asarray(ref2),
                               rtol=2e-5, atol=1e-5)

    print("KERNEL_OK")
</pallas_src>

<mosaic_0001>
module attributes {stable_mosaic.version = 11 : i64} {
  func.func @_loss_kernel_labels(%arg0: i32, %arg1: i32, %arg2: memref<1x4x2x128xf32, #tpu.memory_space<vmem>>, %arg3: memref<1x1x2x128xi32, #tpu.memory_space<vmem>>, %arg4: memref<1x1x1xf32, #tpu.memory_space<vmem>>, %arg5: memref<2x128xf32, #tpu.memory_space<vmem>>) attributes {dimension_semantics = [#tpu.dimension_semantics<parallel>, #tpu.dimension_semantics<arbitrary>], iteration_bounds = array<i64: 2, 1>, scalar_prefetch = 0 : i64, scratch_operands = 1 : i64, tpu.core_type = #tpu.core_type<tc>, window_params = [{transform_indices = @transform_0, window_bounds = array<i64: 1, 4, 2, 128>}, {transform_indices = @transform_1, window_bounds = array<i64: 1, 1, 2, 128>}, {transform_indices = @transform_2, window_bounds = array<i64: 1, 1, 1>}]} {
    %c0_i32 = arith.constant 0 : i32
    %0 = arith.cmpi eq, %arg1, %c0_i32 : i32
    %1 = arith.extui %0 : i1 to i32
    %c0_i32_0 = arith.constant 0 : i32
    %2 = arith.cmpi ne, %1, %c0_i32_0 : i32
    scf.if %2 {
      %cst_25 = arith.constant 0.000000e+00 : f32
      %64 = vector.broadcast %cst_25 : f32 to vector<2x128xf32>
      %c0_26 = arith.constant 0 : index
      %c0_27 = arith.constant 0 : index
      %65 = vector.load %arg5[%c0_26, %c0_27] : memref<2x128xf32, #tpu.memory_space<vmem>>, vector<2x128xf32>
      tpu.vector_store %arg5[%c0_26, %c0_27], %64 {strides = array<i32>} : memref<2x128xf32, #tpu.memory_space<vmem>>, vector<2x128xf32>,
    } else {
    }
    %c0 = arith.constant 0 : index
    %c0_1 = arith.constant 0 : index
    %c0_2 = arith.constant 0 : index
    %c0_3 = arith.constant 0 : index
    %3 = vector.load %arg2[%c0, %c0_1, %c0_2, %c0_3] : memref<1x4x2x128xf32, #tpu.memory_space<vmem>>, vector<1x4x2x128xf32>
    %4 = vector.shape_cast %3 : vector<1x4x2x128xf32> to vector<4x2x128xf32>
    %c0_4 = arith.constant 0 : index
    %c0_5 = arith.constant 0 : index
    %c0_6 = arith.constant 0 : index
    %c0_7 = arith.constant 0 : index
    %5 = vector.load %arg3[%c0_4, %c0_5, %c0_6, %c0_7] : memref<1x1x2x128xi32, #tpu.memory_space<vmem>>, vector<1x1x2x128xi32>
    %6 = vector.shape_cast %5 : vector<1x1x2x128xi32> to vector<2x128xi32>
    %cst = arith.constant 0.000000e+00 : f32
    %7 = vector.broadcast %cst : f32 to vector<2x128xf32>
    %c0_i32_8 = arith.constant 0 : i32
    %8 = vector.broadcast %c0_i32_8 : i32 to vector<2x128xi32>
    %9 = arith.cmpi eq, %6, %8 : vector<2x128xi32>
    %10 = vector.extract_strided_slice %4 {offsets = [0, 0, 0], sizes = [1, 2, 128], strides = [1, 1, 1]} : vector<4x2x128xf32> to vector<1x2x128xf32>
    %11 = vector.shape_cast %10 : vector<1x2x128xf32> to vector<2x128xf32>
    %cst_9 = arith.constant 0.000000e+00 : f32
    %12 = vector.broadcast %cst_9 : f32 to vector<2x128xf32>
    %13 = arith.select %9, %11, %12 : vector<2x128xi1>, vector<2x128xf32>
    %14 = arith.addf %7, %13 : vector<2x128xf32>
    %c1_i32 = arith.constant 1 : i32
    %15 = vector.broadcast %c1_i32 : i32 to vector<2x128xi32>
    %16 = arith.cmpi eq, %6, %15 : vector<2x128xi32>
    %17 = vector.extract_strided_slice %4 {offsets = [1, 0, 0], sizes = [1, 2, 128], strides = [1, 1, 1]} : vector<4x2x128xf32> to vector<1x2x128xf32>
    %18 = vector.shape_cast %17 : vector<1x2x128xf32> to vector<2x128xf32>
    %cst_10 = arith.constant 0.000000e+00 : f32
    %19 = vector.broadcast %cst_10 : f32 to vector<2x128xf32>
    %20 = arith.select %16, %18, %19 : vector<2x128xi1>, vector<2x128xf32>
    %21 = arith.addf %14, %20 : vector<2x128xf32>
    %c2_i32 = arith.constant 2 : i32
    %22 = vector.broadcast %c2_i32 : i32 to vector<2x128xi32>
    %23 = arith.cmpi eq, %6, %22 : vector<2x128xi32>
    %24 = vector.extract_strided_slice %4 {offsets = [2, 0, 0], sizes = [1, 2, 128], strides = [1, 1, 1]} : vector<4x2x128xf32> to vector<1x2x128xf32>
    %25 = vector.shape_cast %24 : vector<1x2x128xf32> to vector<2x128xf32>
    %cst_11 = arith.constant 0.000000e+00 : f32
    %26 = vector.broadcast %cst_11 : f32 to vector<2x128xf32>
    %27 = arith.select %23, %25, %26 : vector<2x128xi1>, vector<2x128xf32>
    %28 = arith.addf %21, %27 : vector<2x128xf32>
    %c3_i32 = arith.constant 3 : i32
    %29 = vector.broadcast %c3_i32 : i32 to vector<2x128xi32>
    %30 = arith.cmpi eq, %6, %29 : vector<2x128xi32>
    %31 = vector.extract_strided_slice %4 {offsets = [3, 0, 0], sizes = [1, 2, 128], strides = [1, 1, 1]} : vector<4x2x128xf32> to vector<1x2x128xf32>
    %32 = vector.shape_cast %31 : vector<1x2x128xf32> to vector<2x128xf32>
    %cst_12 = arith.constant 0.000000e+00 : f32
    %33 = vector.broadcast %cst_12 : f32 to vector<2x128xf32>
    %34 = arith.select %30, %32, %33 : vector<2x128xi1>, vector<2x128xf32>
    %35 = arith.addf %28, %34 : vector<2x128xf32>
    %cst_13 = arith.constant 2.000000e+00 : f32
    %36 = vector.broadcast %cst_13 : f32 to vector<2x128xf32>
    %37 = arith.mulf %36, %35 : vector<2x128xf32>
    %cst_14 = arith.constant 1.000000e+00 : f32
    %38 = vector.broadcast %cst_14 : f32 to vector<2x128xf32>
    %39 = arith.subf %38, %37 : vector<2x128xf32>
    %cst_15 = arith.constant 1.000000e+02 : f32
    %40 = vector.broadcast %cst_15 : f32 to vector<2x128xf32>
    %41 = arith.mulf %39, %40 : vector<2x128xf32>
    %cst_16 = arith.constant 4.595120e+00 : f32
    %42 = vector.broadcast %cst_16 : f32 to vector<2x128xf32>
    %43 = arith.addf %41, %42 : vector<2x128xf32>
    %cst_17 = arith.constant 0.000000e+00 : f32
    %44 = vector.broadcast %cst_17 : f32 to vector<2x128xf32>
    %45 = arith.maximumf %44, %43 : vector<2x128xf32>
    %46 = vector.broadcast %cst_17 : f32 to vector<2x128xf32>
    %47 = arith.subf %46, %43 : vector<2x128xf32>
    %48 = arith.cmpf one, %47, %47 : vector<2x128xf32>
    %49 = vector.broadcast %cst_17 : f32 to vector<2x128xf32>
    %50 = arith.addf %49, %43 : vector<2x128xf32>
    %51 = math.absf %47 : vector<2x128xf32>
    %cst_18 = arith.constant 0.000000e+00 : f32
    %52 = vector.broadcast %cst_18 : f32 to vector<2x128xf32>
    %53 = arith.subf %52, %51 : vector<2x128xf32>
    %54 = math.exp %53 : vector<2x128xf32>
    %55 = math.log1p %54 : vector<2x128xf32>
    %56 = arith.addf %45, %55 : vector<2x128xf32>
    %57 = arith.select %48, %50, %56 : vector<2x128xi1>, vector<2x128xf32>
    %c0_19 = arith.constant 0 : index
    %c0_20 = arith.constant 0 : index
    %58 = vector.load %arg5[%c0_19, %c0_20] : memref<2x128xf32, #tpu.memory_space<vmem>>, vector<2x128xf32>
    %59 = arith.addf %58, %57 : vector<2x128xf32>
    %c0_21 = arith.constant 0 : index
    %c0_22 = arith.constant 0 : index
    %60 = vector.load %arg5[%c0_21, %c0_22] : memref<2x128xf32, #tpu.memory_space<vmem>>, vector<2x128xf32>
    tpu.vector_store %arg5[%c0_21, %c0_22], %59 {strides = array<i32>} : memref<2x128xf32, #tpu.memory_space<vmem>>, vector<2x128xf32>,
    %c0_i32_23 = arith.constant 0 : i32
    %61 = arith.cmpi eq, %arg1, %c0_i32_23 : i32
    %62 = arith.extui %61 : i1 to i32
    %c0_i32_24 = arith.constant 0 : i32
    %63 = arith.cmpi ne, %62, %c0_i32_24 : i32
    scf.if %63 {
      %c0_25 = arith.constant 0 : index
      %c0_26 = arith.constant 0 : index
      %64 = vector.load %arg5[%c0_25, %c0_26] : memref<2x128xf32, #tpu.memory_space<vmem>>, vector<2x128xf32>
      %65 = vector.shape_cast %64 : vector<2x128xf32> to vector<1x2x128xf32>
      %cst_27 = arith.constant dense<0.000000e+00> : vector<1xf32>
      %66 = vector.multi_reduction <add>, %65, %cst_27 [1, 2] : vector<1x2x128xf32> to vector<1xf32>
      %67 = vector.shape_cast %66 : vector<1xf32> to vector<1x1x1xf32>
      %68 = vector.extract %67[0, 0, 0] : f32 from vector<1x1x1xf32>
      %69 = vector.broadcast %68 : f32 to vector<1x1x1xf32>
      %c0_28 = arith.constant 0 : index
      %c0_29 = arith.constant 0 : index
      %c0_30 = arith.constant 0 : index
      %70 = vector.load %arg4[%c0_28, %c0_29, %c0_30] : memref<1x1x1xf32, #tpu.memory_space<vmem>>, vector<1x1x1xf32>
      tpu.vector_store %arg4[%c0_28, %c0_29, %c0_30], %69 {strides = array<i32>} : memref<1x1x1xf32, #tpu.memory_space<vmem>>, vector<1x1x1xf32>,
    } else {
    }
    return
  }
  func.func @transform_0(%arg0: i32, %arg1: i32) -> (i32, i32, i32, i32) {
    %c0_i32 = arith.constant 0 : i32
    %c0_i32_0 = arith.constant 0 : i32
    %c0_i32_1 = arith.constant 0 : i32
    return %arg0, %c0_i32, %arg1, %c0_i32_0 : i32, i32, i32, i32
  }
  func.func @transform_1(%arg0: i32, %arg1: i32) -> (i32, i32, i32, i32) {
    %c0_i32 = arith.constant 0 : i32
    %c0_i32_0 = arith.constant 0 : i32
    %c0_i32_1 = arith.constant 0 : i32
    return %arg0, %c0_i32, %arg1, %c0_i32_0 : i32, i32, i32, i32
  }
  func.func @transform_2(%arg0: i32, %arg1: i32) -> (i32, i32, i32) {
    %c0_i32 = arith.constant 0 : i32
    %c0_i32_0 = arith.constant 0 : i32
    %c0_i32_1 = arith.constant 0 : i32
    return %arg0, %c0_i32, %c0_i32_0 : i32, i32, i32
  }
}

</mosaic_0001>

<bundles_post_ra>
// kernel: tpu_custom_call.1
= control target key start
LH: loop header
LB: loop body
LE: loop exit
PB: predicated region body
PF: predicated region fallthrough
CT: control target
= control target key end

     0   :  { %7 = vsyncpa [#allocation4], 0  ;;  %s714_s0 = inlined_call_operand.hbm [shape: f32[2,4,2,128], index: 0, kind: input, shape index: {}]   ;;  %s715_s1 = inlined_call_operand.hbm [shape: s32[2,1,2,128], index: 1, kind: input, shape index: {}]   ;;  %s716_s2 = inlined_call_operand.vmem [shape: f32[2,1,1], index: 2, kind: output, shape index: {}]  }
   0x1   :  { %9 = vsyncpa [#allocation4 + $0x1], 0 }
   0x2   :  { %10 = vsyncpa [#allocation6], 0 }
   0x3   :  { %12 = vsyncpa [#allocation6 + $0x1], 0  ;;  %s590_s9 = smov 0   ;;  %s592_s10 = smov 0  }
   0x4   :  { %s594_s11 = smov 0   ;;  %s596_s12 = smov 0  }
   0x5   :  { %s598_s13 = smov 0   ;;  %s600_s14 = smov 0  }
   0x6 LB: > { %s374_s15 = sadd.s32 4294967295, %s568_s14   ;;  %s30_s16 = sadd.s32 1, %s564_s13  ;;  %s568_s14 = sphi %s600_s14, %s18_s14   ;;  %s564_s13 = sphi %s598_s13, %s725_s13   ;;  %s560_s12 = sphi %s596_s12, %s724_s12   ;;  %s556_s11 = sphi %s594_s11, %s723_s11   ;;  %s552_s10 = sphi %s592_s10, %s722_s10   ;;  %s548_s9 = sphi %s590_s9, %s721_s9  }
   0x7   : > { %p32_p0 = scmp.ge.s32.totalorder %s30_s16, 2  ;;  %s39_s17 = sadd.s32 1, %s556_s11 }
   0x8   : > { %p46_p1 = scmp.ne.s32.totalorder %s556_s11, %s552_s10  ;;  %p47_p2 = scmp.eq.s32.totalorder %s568_s14, 0 }
   0x9   : > { %s727_s16 = smov (%p32_p0, %s30_s16), 0  ;;  %p52_p4 = scmp.ne.s32.totalorder %s552_s10, %s548_s9 }
   0xa   : > { %p626_p3 = por %p47_p2, %p46_p1  ;;  %s34_s19 = ssub.s32 %s564_s13, %s727_s16 }
   0xb   : > { %p53_p5 = scmp.eq.s32.totalorder %s374_s15, 0  ;;  %p37_p6 = scmp.eq.s32.totalorder %s34_s19, 0 }
   0xc   : > { %p402_p8 = scmp.lt.s32.totalorder %s568_s14, 2  ;;  %s642_s22 = sand.u32 1, %s556_s11  }
   0xd   : > { %p633_p7 = por %p53_p5, %p52_p4  ;;  %s388_s23 = sshll.u32 %s564_s13, 7 }
   0xe   : > { %s639_s21 = scalar_select %p37_p6, %s556_s11, %s39_s17  }
   0xf   : > { %s378_s24 = sshll.u32 %s642_s22, 3  ;;  %s141_s27 = scalar_lea.hbm %s714_s0, %s388_s23 }
  0x10   : > { %s134_s28 = scalar_lea.vmem [#allocation3], %s378_s24  ;;  %p651_p9 = pnand %p402_p8, %p626_p3 }
  0x11   : > { %s142_s29 = sshll.u32 %s134_s28, 4  ;;  %s131_s3 = scalar_lea.sflag [#allocation4], %s642_s22  ;;  %s143_s29 = int_to_ptr.vmem [resolvable:$true] %s142_s29 }
  0x12   : > { %p460_p10 = pneg %p651_p9  ;;  %s471_s4 = scalar_lea.vmem %s143_s29, 128 }
  0x13   : > { %p472_p11 = scmp.ne.s32.totalorder %s143_s29, %s471_s4  ;;  %s570_s5 = smov [#allocation3]  }
  0x14   : > { %s476_s6 = sshll.u32 %s570_s5, 4  ;;  %s477_s6 = int_to_ptr.vmem [resolvable:$false] %s476_s6 }
  0x15   : > { %p474_p12 = pnand %p472_p11, %p460_p10  ;;  %s478_s7 = scalar_lea.vmem %s477_s6, 256 }
  0x16   : > { %p479_p0 = scmp.lt.s32.totalorder %s143_s29, %s477_s6  ;;  %p480_p1 = scmp.lt.s32.totalorder %s478_s7, %s471_s4 }
  0x17   : > { %p475_p13 = pneg %p474_p12 }
  0x18   : > { %p481_p2 = por %p480_p1, %p479_p0 }
  0x1a   : > { %p482_p3 = pnand %p481_p2, %p475_p13 }
  0x1c   : > { %485 = shalt.err (!%p482_p3)
}
  0x1d   : > { %s571_s8 = smov 32   ;;  %s572_s9 = smov 2  }
  0x1e   : > { %398 = dma.hbm_to_vmem [thread:$0]  (!%p651_p9), %s141_s27, 128, %s143_s29, %s131_s3, %s571_s8, %s571_s8, %s572_s9  }
  0x1f   : > { %p383_p4 = scmp.ge.s32.totalorder %s568_s14, 1  ;;  %p169_p5 = scmp.lt.s32.totalorder %s568_s14, 3 }
  0x20   : > { %s381_s15 = sshll.u32 %s642_s22, 1  ;;  %s382_s18 = sshll.u32 %s564_s13, 5 }
  0x21   : > { %p666_p6 = pnand %p383_p4, %p169_p5  ;;  %s156_s19 = scalar_lea.vmem [#allocation5], %s381_s15 }
  0x22   : > { %s164_s23 = sshll.u32 %s156_s19, 4  ;;  %s162_s26 = scalar_lea.hbm %s715_s1, %s382_s18  ;;  %s165_s23 = int_to_ptr.vmem [resolvable:$true] %s164_s23 }
  0x23   : > { %s153_s28 = scalar_lea.sflag [#allocation6], %s642_s22  ;;  %s499_s4 = scalar_lea.vmem %s165_s23, 32 }
  0x24   : > { %p500_p8 = scmp.ne.s32.totalorder %s165_s23, %s499_s4  ;;  %s573_s27 = smov [#allocation5]  }
  0x25   : > { %s504_s29 = sshll.u32 %s573_s27, 4  ;;  %s505_s29 = int_to_ptr.vmem [resolvable:$false] %s504_s29 }
  0x26   : > { %p502_p11 = pnand %p500_p8, %p460_p10  ;;  %s506_s3 = scalar_lea.vmem %s505_s29, 64 }
  0x27   : > { %p507_p13 = scmp.lt.s32.totalorder %s165_s23, %s505_s29  ;;  %p508_p0 = scmp.lt.s32.totalorder %s506_s3, %s499_s4 }
  0x28   : > { %p503_p12 = pneg %p502_p11 }
  0x29   : > { %p509_p1 = por %p508_p0, %p507_p13 }
  0x2b   : > { %p510_p2 = pnand %p509_p1, %p503_p12 }
  0x2d   : > { %513 = shalt.err (!%p510_p2)
}
  0x2e   : > { %401 = dma.hbm_to_vmem [thread:$0]  (!%p651_p9), %s162_s26, 32, %s165_s23, %s153_s28  }
  0x2f   : > { %173 = sbr.rel (%p666_p6) target bundleno = 331 (0x14b), region = 28  ;;  %s175_s22 = sand.u32 (!%p666_p6), 1, %s552_s10  }
  0x30   : > { %s384_s5 = sshll.u32 (!%p666_p6), %s175_s22, 3  ;;  %s176_s6 = scalar_lea.sflag (!%p666_p6), [#allocation4], %s175_s22 }
  0x31   : > { %s179_s7 = scalar_lea.vmem (!%p666_p6), [#allocation3], %s384_s5 }
  0x34   : > { %539 = dma.done.wait (%p633_p7), %s176_s6, 128  }
  0x35   : > { %541 = vsyncadd (%p633_p7), %s176_s6, 4294967168  ;;  %s385_s8 = sshll.u32 %s175_s22, 1  ;;  %s185_s9 = scalar_lea.sflag [#allocation6], %s175_s22 }
  0x36   : > { %s188_s15 = scalar_lea.vmem [#allocation5], %s385_s8 }
  0x37   : > { %543 = dma.done.wait (%p633_p7), %s185_s9, 32  }
  0x38   : > { %545 = vsyncadd (%p633_p7), %s185_s9, 4294967264  ;;  %v574_v0 = vmov 0.0   ;;  %v220_v1 = vld [vmem:[%s179_s7] sm:$0x3]  ;;  %v221_v2 = vld [vmem:[%s179_s7 + $0x2] sm:$0x3] }
  0x39   : > { %219 = vst [vmem:[#allocation2] sm:$0x3] %v574_v0  ;;  %v222_v3 = vld [vmem:[%s179_s7 + $0x4] sm:$0x3]  ;;  %v224_v4 = vld [vmem:[%s188_s15] sm:$0x3] }
  0x3a   : > { %v223_v5 = vld [vmem:[%s179_s7 + $0x6] sm:$0x3]  ;;  %vm225_vm0 = vcmp.eq.s32.totalorder %v224_v4, 0  ;;  %vm228_vm1 = vcmp.eq.s32.totalorder %v224_v4, 1  ;;  %vm231_vm2 = vcmp.eq.s32.totalorder %v224_v4, 2  ;;  %vm234_vm3 = vcmp.eq.s32.totalorder %v224_v4, 3 }
  0x3b   : > { %v226_v6 = vsel %vm225_vm0, %v220_v1, 0.0  ;;  %v229_v7 = vsel %vm228_vm1, %v221_v2, 0.0  ;;  %v232_v8 = vsel %vm231_vm2, %v222_v3, 0.0  ;;  %v235_v10 = vsel %vm234_vm3, %v223_v5, 0.0  ;;  %p212_p7 = scmp.lt.s32.totalorder %s560_s12, 1 }
  0x3c   : > { %v230_v9 = vadd.f32 %v229_v7, %v226_v6  ;;  %vm267_vm6 = vcmask 1041408   ;;  %vm279_vm7 = vcmask 0  }
  0x3d   : > { %s729_s12 = smov (!%p212_p7, %s560_s12), 1 }
  0x3e   : > { %v233_v11 = vadd.f32 %v232_v8, %v230_v9  ;;  %s214_s17 = scalar_lea.vmem %s716_s2, %s729_s12 }
  0x40   : > { %v236_v12 = vadd.f32 %v235_v10, %v233_v11  ;;  %v260_v32 = vld [vmem:[#allocation2] sm:$0x3] }
  0x42   : > { %v237_v13 = vmul.f32 2.0, %v236_v12 }
  0x44   : > { %v238_v14 = vsub.f32 1.0, %v237_v13 }
  0x46   : > { %v239_v15 = vmul.f32 100.0, %v238_v14 }
  0x48   : > { %v240_v16 = vadd.f32 4.59512, %v239_v15 }
  0x4a   : > { %v242_v17 = vsub.f32 0.0, %v240_v16  ;;  %v241_v28 = vmax.f32 %v240_v16, 0.0 }
  0x4c   : > { %v245_v18 = vand.u32 2147483647, %v242_v17  ;;  %vm243_vm5 = vcmp.ne.f32.partialorder %v242_v17, %v242_v17 }
  0x4e   : > { %v246_v19 = vsub.f32 0.0, %v245_v18 }
  0x50   : > { %v247_v20 = vmul.f32 1.442695, %v246_v19 }
  0x52   : > { %454 = vpow2.f32 %v247_v20 }
  0x5f   : > { %v455_v21 = vpop.eup %454 }
  0x60   : > { %v249_v22 = vadd.f32 1.0, %v455_v21  ;;  %v252_v23 = vmul.f32 -0.5, %v455_v21  ;;  %v255_v25 = vand.u32 2147483647, %v455_v21 }
  0x62   : > { %456 = vlog2.f32 %v249_v22  ;;  %v253_v24 = vadd.f32 1.0, %v252_v23  ;;  %vm256_vm4 = vcmp.lt.f32.partialorder %v255_v25, 0.0004427343 }
  0x64   : > { %v254_v26 = vmul.f32 %v455_v21, %v253_v24 }
  0x6f   : > { %v457_v27 = vpop.eup %456 }
  0x70   : > { %v251_v29 = vmul.f32 0.6931472, %v457_v27 }
  0x72   : > { %v257_v30 = vsel %vm256_vm4, %v254_v26, %v251_v29 }
  0x73   : > { %v258_v31 = vadd.f32 %v257_v30, %v241_v28 }
  0x75   : > { %v259_v33 = vsel %vm243_vm5, %v240_v16, %v258_v31 }
  0x76   : > { %v261_v34 = vadd.f32 %v260_v32, %v259_v33 }
  0x78   : > { %262 = vst [vmem:[#allocation2] sm:$0x3] %v261_v34 }
  0x7f   : > { %v266_v35 = vld [vmem:[#allocation2] sm:$0x3] }
  0x80   : > { %v268_v36 = vsel %vm267_vm6, %v266_v35, 0.0 }
  0x81   : > { %269 = vadd.xlane.f32.xlu0 %v268_v36 }
 0x10a   : > { %v270_v37 = vpop.xlane.xlu0 %269 }
 0x10b   : > { %v271_v38 = vrot.slane %v270_v37, 4 }
 0x10d   : > { %v272_v39 = vadd.f32 %v271_v38, %v270_v37 }
 0x10f   : > { %v273_v40 = vrot.slane %v272_v39, 2 }
 0x111   : > { %v274_v41 = vadd.f32 %v273_v40, %v272_v39 }
 0x113   : > { %v275_v42 = vrot.slane %v274_v41, 1 }
 0x115   : > { %v276_v43 = vadd.f32 %v275_v42, %v274_v41 }
 0x117   : > { %389 = vpush %v276_v43 }
 0x148   : > { %s390_s18 = spop %389 }
 0x149   : > { %v278_v44 = vstv %s390_s18 }
 0x14a   : > { %280 = vst.msk [vmem:[%s214_s17] sm:$0x1] %vm279_vm7, %v278_v44 }
 0x14b PF: > { %s18_s14 = sadd.s32 1, %s568_s14   ;;  %s721_s9 = smov %s552_s10 }
 0x14c   : > { %p15_p9 = scmp.ge.s32.totalorder %s18_s14, 4   ;;  %s722_s10 = smov %s556_s11 }
 0x14d   : > { %s723_s11 = smov %s639_s21  ;;  %s724_s12 = smov %s564_s13 }
 0x14e   : > { %s725_s13 = smov %s727_s16  ;;  %17 = sbr.rel (!%p15_p9) target bundleno = 6 (0x6), region = 89 }
 0x153   :  { %298 = vsyncpa [#allocation4], 1 }
 0x154   :  { %300 = vsyncpa [#allocation4 + $0x1], 1 }
 0x155   :  { %301 = vsyncpa [#allocation6], 1 }
 0x156   :  { %303 = vsyncpa [#allocation6 + $0x1], 1 }

</bundles_post_ra>
